<compile_context>
chip_gen: v7x
topology: tpu7x:2x2x1
jax: 0.10.0
libtpu: 0.0.40
codegen_flags: <defaults>
</compile_context>

<pallas_src>
import jax
import jax.numpy as jnp
from jax.experimental import pallas as pl
from jax.experimental.pallas import tpu as pltpu  # noqa: F401  (TPU backend)

EPS = 1e-5  # BatchNorm2d default eps


def gnn_kernel(x_ref, w_ref, gb_ref, o_ref):
    # x_ref : (B, C, N)   native NCHW, N = H*W on the lane axis
    # w_ref : (C, O, 1)   linear weight columns, sublane-oriented per channel
    # gb_ref: (2, O, 1)   [0] = gamma, [1] = beta (BN affine)
    # o_ref : (B, O, N)   output in native NCHW layout
    B, C, N = x_ref.shape

    # ---- Linear over channels: y_b[o, n] = sum_c w[c, o] * x_b[c, n] -------
    # C broadcast outer-product FMAs per batch on the VPU (MXU underfilled at
    # K = 4).  B and C are static -> fully unrolled, LLO schedules freely.
    ys = []
    acc_sum = None                                   # sum over b of y_b, (O, N)
    for b in range(B):
        xb = x_ref[b]                                # (C, N)
        yb = w_ref[0] * xb[0:1, :]                   # (O,1)*(1,N) -> (O,N)
        for c in range(1, C):
            yb = yb + w_ref[c] * xb[c:c + 1, :]
        ys.append(yb)
        acc_sum = yb if acc_sum is None else acc_sum + yb

    # ---- Training-mode BatchNorm2d: per-channel stats over (B, H, W) -------
    # Per-channel (sublane) lane-reduce on the XLU; batch reduce is a plain
    # vreg add.  Biased variance, matching PyTorch's normalization in training.
    inv_n = 1.0 / (B * N)
    mean = jnp.sum(acc_sum, axis=1, keepdims=True) * inv_n          # (O, 1)

    acc_sq = None
    for b in range(B):
        d = ys[b] - mean
        sq = d * d
        acc_sq = sq if acc_sq is None else acc_sq + sq
    var = jnp.sum(acc_sq, axis=1, keepdims=True) * inv_n            # (O, 1)

    # Fold normalization + affine into a single per-channel scale / shift.
    scale = jax.lax.rsqrt(var + EPS) * gb_ref[0]                    # (O, 1)
    shift = gb_ref[1] - mean * scale                                # (O, 1)
    for b in range(B):
        o_ref[b] = ys[b] * scale + shift


def gnn_forward(x, lin_w, lin_b, adj_weight, gamma, beta):
    """x: (B, C, H, W) float32 (PyTorch NCHW). Returns (B, O, H, W)."""
    B, C, H, W = x.shape
    O = lin_w.shape[0]

    # The reference's graph matmul needs H == 8 (adj is 8x8) but its result is
    # immediately shadowed (dead code): keep only the shape constraint.
    assert H == 8, "GNN reference requires H == 8 (adj is 8x8)"
    del adj_weight  # only feeds the dead adjacency matmul in the reference
    del lin_b       # per-channel bias cancels exactly under BN mean subtraction

    N = H * W

    # Native-layout views: contiguous reshapes only, no HBM data movement.
    x3d = x.reshape(B, C, N).astype(jnp.float32)                          # (B, C, N)
    w3 = lin_w.T.astype(jnp.float32)[:, :, None]                          # (C, O, 1)
    gb3 = jnp.stack([gamma, beta], axis=0).astype(jnp.float32)[:, :, None]  # (2, O, 1)

    # Whole working set is a few KiB: single grid point, full-array blocks in
    # VMEM.  No vmem_limit / pipelining knobs needed at this size.
    y = pl.pallas_call(
        gnn_kernel,
        out_shape=jax.ShapeDtypeStruct((B, O, N), jnp.float32),
        in_specs=[
            pl.BlockSpec((B, C, N), lambda: (0, 0, 0)),
            pl.BlockSpec((C, O, 1), lambda: (0, 0, 0)),
            pl.BlockSpec((2, O, 1), lambda: (0, 0, 0)),
        ],
        out_specs=pl.BlockSpec((B, O, N), lambda: (0, 0, 0)),
    )(x3d, w3, gb3)

    return y.reshape(B, O, H, W)


if __name__ == "__main__":
    # Shapes implied by the module: adj is 8x8 so H must be 8; in_channel = C.
    B, C, H, W = 2, 4, 8, 16
    O = 8  # out_channel

    key = jax.random.PRNGKey(0)
    k_x, k_w, k_b, k_adj, k_g, k_be = jax.random.split(key, 6)

    x = jax.random.normal(k_x, (B, C, H, W), dtype=jnp.float32)

    # Synthetic parameters: nn.Linear(C, O), adj_weight (8, 8), BatchNorm2d(O).
    lin_w = jax.random.normal(k_w, (O, C), dtype=jnp.float32) * 0.1
    lin_b = jax.random.normal(k_b, (O,), dtype=jnp.float32) * 0.1
    adj_weight = jax.random.normal(k_adj, (8, 8), dtype=jnp.float32)
    gamma = 1.0 + 0.1 * jax.random.normal(k_g, (O,), dtype=jnp.float32)
    beta = 0.1 * jax.random.normal(k_be, (O,), dtype=jnp.float32)

    out = gnn_forward(x, lin_w, lin_b, adj_weight, gamma, beta)
    jax.block_until_ready(out)
    assert out.shape == (B, O, H, W), out.shape

    # Pure-JAX reference (linear WITH bias + training-mode batchnorm); also
    # confirms the bias-cancellation used by the kernel.
    ref_lin = jnp.einsum("bchw,oc->bohw", x, lin_w) + lin_b[None, :, None, None]
    m = jnp.mean(ref_lin, axis=(0, 2, 3), keepdims=True)
    v = jnp.mean((ref_lin - m) ** 2, axis=(0, 2, 3), keepdims=True)
    ref = (ref_lin - m) * jax.lax.rsqrt(v + EPS) * gamma[None, :, None, None] \
        + beta[None, :, None, None]
    err = float(jnp.max(jnp.abs(out - ref)))
    assert jnp.allclose(out, ref, atol=1e-4, rtol=1e-4), err

    print("KERNEL_OK")
</pallas_src>

<mosaic_0001>
module attributes {stable_mosaic.version = 11 : i64} {
  func.func @gnn_kernel(%arg0: memref<2x4x128xf32, #tpu.memory_space<vmem>>, %arg1: memref<4x8x1xf32, #tpu.memory_space<vmem>>, %arg2: memref<2x8x1xf32, #tpu.memory_space<vmem>>, %arg3: memref<2x8x128xf32, #tpu.memory_space<vmem>>) attributes {dimension_semantics = [], scalar_prefetch = 0 : i64, scratch_operands = 0 : i64, tpu.core_type = #tpu.core_type<tc>} {
    %c0 = arith.constant 0 : index
    %c0_0 = arith.constant 0 : index
    %c0_1 = arith.constant 0 : index
    %0 = vector.load %arg0[%c0, %c0_0, %c0_1] : memref<2x4x128xf32, #tpu.memory_space<vmem>>, vector<1x4x128xf32>
    %1 = vector.shape_cast %0 : vector<1x4x128xf32> to vector<4x128xf32>
    %c0_2 = arith.constant 0 : index
    %c0_3 = arith.constant 0 : index
    %c0_4 = arith.constant 0 : index
    %2 = vector.load %arg1[%c0_2, %c0_3, %c0_4] : memref<4x8x1xf32, #tpu.memory_space<vmem>>, vector<1x8x1xf32>
    %3 = vector.shape_cast %2 : vector<1x8x1xf32> to vector<8x1xf32>
    %4 = vector.extract_strided_slice %1 {offsets = [0, 0], sizes = [1, 128], strides = [1, 1]} : vector<4x128xf32> to vector<1x128xf32>
    %5 = vector.broadcast %3 : vector<8x1xf32> to vector<8x128xf32>
    %6 = vector.broadcast %4 : vector<1x128xf32> to vector<8x128xf32>
    %7 = arith.mulf %5, %6 : vector<8x128xf32>
    %c1 = arith.constant 1 : index
    %c0_5 = arith.constant 0 : index
    %c0_6 = arith.constant 0 : index
    %8 = vector.load %arg1[%c1, %c0_5, %c0_6] : memref<4x8x1xf32, #tpu.memory_space<vmem>>, vector<1x8x1xf32>
    %9 = vector.shape_cast %8 : vector<1x8x1xf32> to vector<8x1xf32>
    %10 = vector.extract_strided_slice %1 {offsets = [1, 0], sizes = [1, 128], strides = [1, 1]} : vector<4x128xf32> to vector<1x128xf32>
    %11 = vector.broadcast %9 : vector<8x1xf32> to vector<8x128xf32>
    %12 = vector.broadcast %10 : vector<1x128xf32> to vector<8x128xf32>
    %13 = arith.mulf %11, %12 : vector<8x128xf32>
    %14 = arith.addf %7, %13 : vector<8x128xf32>
    %c2 = arith.constant 2 : index
    %c0_7 = arith.constant 0 : index
    %c0_8 = arith.constant 0 : index
    %15 = vector.load %arg1[%c2, %c0_7, %c0_8] : memref<4x8x1xf32, #tpu.memory_space<vmem>>, vector<1x8x1xf32>
    %16 = vector.shape_cast %15 : vector<1x8x1xf32> to vector<8x1xf32>
    %17 = vector.extract_strided_slice %1 {offsets = [2, 0], sizes = [1, 128], strides = [1, 1]} : vector<4x128xf32> to vector<1x128xf32>
    %18 = vector.broadcast %16 : vector<8x1xf32> to vector<8x128xf32>
    %19 = vector.broadcast %17 : vector<1x128xf32> to vector<8x128xf32>
    %20 = arith.mulf %18, %19 : vector<8x128xf32>
    %21 = arith.addf %14, %20 : vector<8x128xf32>
    %c3 = arith.constant 3 : index
    %c0_9 = arith.constant 0 : index
    %c0_10 = arith.constant 0 : index
    %22 = vector.load %arg1[%c3, %c0_9, %c0_10] : memref<4x8x1xf32, #tpu.memory_space<vmem>>, vector<1x8x1xf32>
    %23 = vector.shape_cast %22 : vector<1x8x1xf32> to vector<8x1xf32>
    %24 = vector.extract_strided_slice %1 {offsets = [3, 0], sizes = [1, 128], strides = [1, 1]} : vector<4x128xf32> to vector<1x128xf32>
    %25 = vector.broadcast %23 : vector<8x1xf32> to vector<8x128xf32>
    %26 = vector.broadcast %24 : vector<1x128xf32> to vector<8x128xf32>
    %27 = arith.mulf %25, %26 : vector<8x128xf32>
    %28 = arith.addf %21, %27 : vector<8x128xf32>
    %c1_11 = arith.constant 1 : index
    %c0_12 = arith.constant 0 : index
    %c0_13 = arith.constant 0 : index
    %29 = vector.load %arg0[%c1_11, %c0_12, %c0_13] : memref<2x4x128xf32, #tpu.memory_space<vmem>>, vector<1x4x128xf32>
    %30 = vector.shape_cast %29 : vector<1x4x128xf32> to vector<4x128xf32>
    %c0_14 = arith.constant 0 : index
    %c0_15 = arith.constant 0 : index
    %c0_16 = arith.constant 0 : index
    %31 = vector.load %arg1[%c0_14, %c0_15, %c0_16] : memref<4x8x1xf32, #tpu.memory_space<vmem>>, vector<1x8x1xf32>
    %32 = vector.shape_cast %31 : vector<1x8x1xf32> to vector<8x1xf32>
    %33 = vector.extract_strided_slice %30 {offsets = [0, 0], sizes = [1, 128], strides = [1, 1]} : vector<4x128xf32> to vector<1x128xf32>
    %34 = vector.broadcast %32 : vector<8x1xf32> to vector<8x128xf32>
    %35 = vector.broadcast %33 : vector<1x128xf32> to vector<8x128xf32>
    %36 = arith.mulf %34, %35 : vector<8x128xf32>
    %c1_17 = arith.constant 1 : index
    %c0_18 = arith.constant 0 : index
    %c0_19 = arith.constant 0 : index
    %37 = vector.load %arg1[%c1_17, %c0_18, %c0_19] : memref<4x8x1xf32, #tpu.memory_space<vmem>>, vector<1x8x1xf32>
    %38 = vector.shape_cast %37 : vector<1x8x1xf32> to vector<8x1xf32>
    %39 = vector.extract_strided_slice %30 {offsets = [1, 0], sizes = [1, 128], strides = [1, 1]} : vector<4x128xf32> to vector<1x128xf32>
    %40 = vector.broadcast %38 : vector<8x1xf32> to vector<8x128xf32>
    %41 = vector.broadcast %39 : vector<1x128xf32> to vector<8x128xf32>
    %42 = arith.mulf %40, %41 : vector<8x128xf32>
    %43 = arith.addf %36, %42 : vector<8x128xf32>
    %c2_20 = arith.constant 2 : index
    %c0_21 = arith.constant 0 : index
    %c0_22 = arith.constant 0 : index
    %44 = vector.load %arg1[%c2_20, %c0_21, %c0_22] : memref<4x8x1xf32, #tpu.memory_space<vmem>>, vector<1x8x1xf32>
    %45 = vector.shape_cast %44 : vector<1x8x1xf32> to vector<8x1xf32>
    %46 = vector.extract_strided_slice %30 {offsets = [2, 0], sizes = [1, 128], strides = [1, 1]} : vector<4x128xf32> to vector<1x128xf32>
    %47 = vector.broadcast %45 : vector<8x1xf32> to vector<8x128xf32>
    %48 = vector.broadcast %46 : vector<1x128xf32> to vector<8x128xf32>
    %49 = arith.mulf %47, %48 : vector<8x128xf32>
    %50 = arith.addf %43, %49 : vector<8x128xf32>
    %c3_23 = arith.constant 3 : index
    %c0_24 = arith.constant 0 : index
    %c0_25 = arith.constant 0 : index
    %51 = vector.load %arg1[%c3_23, %c0_24, %c0_25] : memref<4x8x1xf32, #tpu.memory_space<vmem>>, vector<1x8x1xf32>
    %52 = vector.shape_cast %51 : vector<1x8x1xf32> to vector<8x1xf32>
    %53 = vector.extract_strided_slice %30 {offsets = [3, 0], sizes = [1, 128], strides = [1, 1]} : vector<4x128xf32> to vector<1x128xf32>
    %54 = vector.broadcast %52 : vector<8x1xf32> to vector<8x128xf32>
    %55 = vector.broadcast %53 : vector<1x128xf32> to vector<8x128xf32>
    %56 = arith.mulf %54, %55 : vector<8x128xf32>
    %57 = arith.addf %50, %56 : vector<8x128xf32>
    %58 = arith.addf %28, %57 : vector<8x128xf32>
    %cst = arith.constant dense<0.000000e+00> : vector<8xf32>
    %59 = vector.multi_reduction <add>, %58, %cst [1] : vector<8x128xf32> to vector<8xf32>
    %60 = vector.shape_cast %59 : vector<8xf32> to vector<8x1xf32>
    %cst_26 = arith.constant 3.906250e-03 : f32
    %61 = vector.broadcast %cst_26 : f32 to vector<8x1xf32>
    %62 = arith.mulf %60, %61 : vector<8x1xf32>
    %63 = vector.broadcast %62 : vector<8x1xf32> to vector<8x128xf32>
    %64 = arith.subf %28, %63 : vector<8x128xf32>
    %65 = arith.mulf %64, %64 : vector<8x128xf32>
    %66 = vector.broadcast %62 : vector<8x1xf32> to vector<8x128xf32>
    %67 = arith.subf %57, %66 : vector<8x128xf32>
    %68 = arith.mulf %67, %67 : vector<8x128xf32>
    %69 = arith.addf %65, %68 : vector<8x128xf32>
    %cst_27 = arith.constant dense<0.000000e+00> : vector<8xf32>
    %70 = vector.multi_reduction <add>, %69, %cst_27 [1] : vector<8x128xf32> to vector<8xf32>
    %71 = vector.shape_cast %70 : vector<8xf32> to vector<8x1xf32>
    %cst_28 = arith.constant 3.906250e-03 : f32
    %72 = vector.broadcast %cst_28 : f32 to vector<8x1xf32>
    %73 = arith.mulf %71, %72 : vector<8x1xf32>
    %cst_29 = arith.constant 9.99999974E-6 : f32
    %74 = vector.broadcast %cst_29 : f32 to vector<8x1xf32>
    %75 = arith.addf %73, %74 : vector<8x1xf32>
    %76 = math.rsqrt %75 : vector<8x1xf32>
    %c0_30 = arith.constant 0 : index
    %c0_31 = arith.constant 0 : index
    %c0_32 = arith.constant 0 : index
    %77 = vector.load %arg2[%c0_30, %c0_31, %c0_32] : memref<2x8x1xf32, #tpu.memory_space<vmem>>, vector<1x8x1xf32>
    %78 = vector.shape_cast %77 : vector<1x8x1xf32> to vector<8x1xf32>
    %79 = arith.mulf %76, %78 : vector<8x1xf32>
    %c1_33 = arith.constant 1 : index
    %c0_34 = arith.constant 0 : index
    %c0_35 = arith.constant 0 : index
    %80 = vector.load %arg2[%c1_33, %c0_34, %c0_35] : memref<2x8x1xf32, #tpu.memory_space<vmem>>, vector<1x8x1xf32>
    %81 = vector.shape_cast %80 : vector<1x8x1xf32> to vector<8x1xf32>
    %82 = arith.mulf %62, %79 : vector<8x1xf32>
    %83 = arith.subf %81, %82 : vector<8x1xf32>
    %84 = vector.broadcast %79 : vector<8x1xf32> to vector<8x128xf32>
    %85 = arith.mulf %28, %84 : vector<8x128xf32>
    %86 = vector.broadcast %83 : vector<8x1xf32> to vector<8x128xf32>
    %87 = arith.addf %85, %86 : vector<8x128xf32>
    %c0_36 = arith.constant 0 : index
    %c0_37 = arith.constant 0 : index
    %c0_38 = arith.constant 0 : index
    %88 = vector.load %arg3[%c0_36, %c0_37, %c0_38] : memref<2x8x128xf32, #tpu.memory_space<vmem>>, vector<1x8x128xf32>
    %89 = vector.shape_cast %88 : vector<1x8x128xf32> to vector<8x128xf32>
    %90 = vector.shape_cast %87 : vector<8x128xf32> to vector<1x8x128xf32>
    tpu.vector_store %arg3[%c0_36, %c0_37, %c0_38], %90 {strides = array<i32>} : memref<2x8x128xf32, #tpu.memory_space<vmem>>, vector<1x8x128xf32>,
    %91 = vector.broadcast %79 : vector<8x1xf32> to vector<8x128xf32>
    %92 = arith.mulf %57, %91 : vector<8x128xf32>
    %93 = vector.broadcast %83 : vector<8x1xf32> to vector<8x128xf32>
    %94 = arith.addf %92, %93 : vector<8x128xf32>
    %c1_39 = arith.constant 1 : index
    %c0_40 = arith.constant 0 : index
    %c0_41 = arith.constant 0 : index
    %95 = vector.load %arg3[%c1_39, %c0_40, %c0_41] : memref<2x8x128xf32, #tpu.memory_space<vmem>>, vector<1x8x128xf32>
    %96 = vector.shape_cast %95 : vector<1x8x128xf32> to vector<8x128xf32>
    %97 = vector.shape_cast %94 : vector<8x128xf32> to vector<1x8x128xf32>
    tpu.vector_store %arg3[%c1_39, %c0_40, %c0_41], %97 {strides = array<i32>} : memref<2x8x128xf32, #tpu.memory_space<vmem>>, vector<1x8x128xf32>,
    return
  }
}

</mosaic_0001>

<bundles_post_ra>
// kernel: tpu_custom_call.1
= control target key start
LH: loop header
LB: loop body
LE: loop exit
PB: predicated region body
PF: predicated region fallthrough
CT: control target
= control target key end

     0   :  { %v181_v2 = vmov 0   ;;  %s241_s0 = inlined_call_operand.vmem [shape: f32[2,4,128], index: 0, kind: input, shape index: {}]   ;;  %s242_s1 = inlined_call_operand.vmem [shape: f32[4,8,1], index: 1, kind: input, shape index: {}]   ;;  %s243_s2 = inlined_call_operand.vmem [shape: f32[2,8,1], index: 2, kind: input, shape index: {}]   ;;  %s244_s3 = inlined_call_operand.hbm [shape: f32[2,8,128], index: 3, kind: output, shape index: {}]  }
   0x1   :  { %v145_v0 = vld [vmem:[%s242_s1 + $0x10] sm:$0xff]  ;;  %v16_v1 = vld [vmem:[%s242_s1] sm:$0xff]  ;;  %154 = vset.pattern.permute.xlu1 %v181_v2  ;;  %153 = vset.pattern.permute.xlu0 %v181_v2 }
   0x2   :  { %44 = vperm.xlu1 %154, %v145_v0   ;;  %19 = vperm.xlu0 %153, %v16_v1  }
   0x3   :  { %8 = vsyncpa [#allocation3], 0  ;;  %v146_v3 = vld [vmem:[%s242_s1 + $0x18] sm:$0xff]  ;;  %v144_v4 = vld [vmem:[%s242_s1 + $0x8] sm:$0xff]  ;;  %v22_v5 = vlaneseq  ;;  %s182_s26 = smov [#allocation2]  }
   0x4   :  { %v147_v9 = vld [vmem:[%s241_s0 + $0x4] sm:$0xf]  ;;  %v15_v10 = vld [vmem:[%s241_s0] sm:$0xf]  ;;  %v148_v53 = vld [vmem:[%s243_s2 + $0x8] sm:$0xff]  ;;  %s133_s27 = sshll.u32 %s182_s26, 4  ;;  %s134_s27 = int_to_ptr.vmem [resolvable:$true] %s133_s27 }
   0x5   :  { %v23_v6 = vshrl.u32 %v22_v5, 7  ;;  %v105_v50 = vld [vmem:[%s243_s2] sm:$0xff]  ;;  %s157_s28 = scalar_lea.vmem %s134_s27, 256  ;;  %p162_p1 = scmp.lt.s32.totalorder %s134_s27, %s134_s27 }
   0x6   :  { %57 = vperm.xlu1 %154, %v146_v3   ;;  %31 = vperm.xlu0 %153, %v144_v4   ;;  %p158_p0 = scmp.ne.s32.totalorder %s134_s27, %s157_s28  ;;  %p163_p2 = scmp.lt.s32.totalorder %s157_s28, %s157_s28 }
   0x7   :  { %v24_v7 = vsub.s32 0, %v23_v6  ;;  %v36_v8 = vsub.s32 1, %v23_v6  ;;  %v49_v11 = vsub.s32 2, %v23_v6  ;;  %v62_v14 = vsub.s32 3, %v23_v6 }
   0x8   :  { %p164_p3 = por %p163_p2, %p162_p1 }
   0x9   :  { %v71_v15 = vrot.slane %v147_v9, %v24_v7  ;;  %v25_v16 = vrot.slane %v15_v10, %v24_v7  ;;  %v76_v17 = vrot.slane %v147_v9, %v36_v8  ;;  %v37_v18 = vrot.slane %v15_v10, %v36_v8 }
   0xa   :  { %v82_v19 = vrot.slane %v147_v9, %v49_v11  ;;  %v50_v20 = vrot.slane %v15_v10, %v49_v11  ;;  %v88_v21 = vrot.slane %v147_v9, %v62_v14  ;;  %v63_v22 = vrot.slane %v15_v10, %v62_v14  ;;  %p165_p4 = pnand %p164_p3, %p158_p0 }
  0x81   :  { %v45_v12 = vpop.permute.xlu1 %44  ;;  %v20_v13 = vpop.permute.xlu0 %19 }
  0x82   :  { %v26_v24 = vmul.f32 %v25_v16, %v20_v13  ;;  %v72_v25 = vmul.f32 %v71_v15, %v20_v13  ;;  %v51_v29 = vmul.f32 %v50_v20, %v45_v12  ;;  %v83_v30 = vmul.f32 %v82_v19, %v45_v12 }
  0x85   :  { %v32_v23 = vpop.permute.xlu0 %31  ;;  %v58_v28 = vpop.permute.xlu1 %57 }
  0x86   :  { %v38_v26 = vmul.f32 %v37_v18, %v32_v23  ;;  %v77_v27 = vmul.f32 %v76_v17, %v32_v23  ;;  %v64_v33 = vmul.f32 %v63_v22, %v58_v28  ;;  %v89_v34 = vmul.f32 %v88_v21, %v58_v28 }
  0x88   :  { %v39_v31 = vadd.f32 %v38_v26, %v26_v24  ;;  %v78_v32 = vadd.f32 %v77_v27, %v72_v25 }
  0x8a   :  { %v52_v35 = vadd.f32 %v51_v29, %v39_v31  ;;  %v84_v36 = vadd.f32 %v83_v30, %v78_v32 }
  0x8c   :  { %v65_v37 = vadd.f32 %v64_v33, %v52_v35  ;;  %v90_v38 = vadd.f32 %v89_v34, %v84_v36 }
  0x8e   :  { %v91_v39 = vadd.f32 %v90_v38, %v65_v37 }
  0x90   :  { %92 = vadd.xlane.f32.xlu0 %v91_v39 }
 0x11d   :  { %v93_v40 = vpop.xlane.xlu0 %92 }
 0x11e   :  { %v94_v41 = vmul.f32 0.00390625, %v93_v40 }
 0x120   :  { %v95_v42 = vsub.f32 %v65_v37, %v94_v41  ;;  %v97_v43 = vsub.f32 %v90_v38, %v94_v41 }
 0x122   :  { %v96_v44 = vmul.f32 %v95_v42, %v95_v42  ;;  %v98_v45 = vmul.f32 %v97_v43, %v97_v43 }
 0x124   :  { %v99_v46 = vadd.f32 %v98_v45, %v96_v44 }
 0x126   :  { %100 = vadd.xlane.f32.xlu1 %v99_v46 }
 0x1b3   :  { %v101_v47 = vpop.xlane.xlu1 %100 }
 0x1b4   :  { %v102_v48 = vmul.f32 0.00390625, %v101_v47 }
 0x1b6   :  { %v103_v49 = vadd.f32 1e-05, %v102_v48 }
 0x1b8   :  { %155 = vrsqrt.f32 %v103_v49 }
 0x1c2   :  { %v156_v51 = vpop.eup %155 }
 0x1c3   :  { %v106_v52 = vmul.f32 %v156_v51, %v105_v50 }
 0x1c5   :  { %113 = vperm.xlu0 %153, %v106_v52   ;;  %v109_v54 = vmul.f32 %v106_v52, %v94_v41 }
 0x1c7   :  { %v110_v55 = vsub.f32 %v148_v53, %v109_v54 }
 0x1c9   :  { %119 = vperm.xlu1 %154, %v110_v55  }
 0x244   :  { %v114_v56 = vpop.permute.xlu0 %113 }
 0x245   :  { %v116_v57 = vmul.f32 %v114_v56, %v65_v37  ;;  %v124_v58 = vmul.f32 %v114_v56, %v90_v38 }
 0x248   :  { %v120_v59 = vpop.permute.xlu1 %119 }
 0x249   :  { %v122_v60 = vadd.f32 %v120_v59, %v116_v57  ;;  %v125_v61 = vadd.f32 %v124_v58, %v120_v59 }
 0x24b   :  { %123 = vst [vmem:[#allocation2] sm:$0xff] %v122_v60  ;;  %127 = vst [vmem:[#allocation2 + $0x8] sm:$0xff] %v125_v61 }
 0x24c   :  { %168 = shalt.err (!%p165_p4)
}
 0x24d   :  { %s169_s30 = scalar_lea.hbm %s244_s3, 256 }
 0x24e   :  { %p170_p5 = scmp.ne.s32.totalorder %s244_s3, %s169_s30  ;;  %p173_p6 = scmp.lt.u32.totalorder %s169_s30, %s244_s3 }
 0x250   :  { %p175_p7 = pnand %p173_p6, %p170_p5 }
 0x252   :  { %178 = shalt.err (!%p175_p7)
}
 0x253   :  { %s183_s8 = smov 128   ;;  %s184_s9 = smov 8  }
 0x254   :  { %139 = dma.vmem_to_hbm [thread:$0]  %s134_s27, 256, %s244_s3, [#allocation3], %s183_s8, %s183_s8, %s184_s9  }
 0x255   :  { %179 = dma.done.wait [#allocation3], 256  }
 0x256   :  { %180 = vsyncadd [#allocation3], 4294967040 }
 0x257   :  { %143 = vsyncpa [#allocation3], 1 }

</bundles_post_ra>
